<compile_context>
chip_gen: v7x
topology: tpu7x:2x2x1
jax: 0.10.0
libtpu: 0.0.40
codegen_flags: <defaults>
</compile_context>

<pallas_src>
import jax
import jax.numpy as jnp
from jax.experimental import pallas as pl
from jax.experimental.pallas import tpu as pltpu


def mlp_kernel(x_ref, w1_ref, b1_ref, w2_ref, b2_ref, w3_ref, b3_ref, o_ref):
    # x: (bm, D)  w1: (D, 32)  b1: (1, 32)  w2: (32, 16)  b2: (1, 16)
    # w3: (1, 16) row-vector   b3: (1, 1) scalar in SMEM  ->  o: (bm, 1)
    x = x_ref[...]
    h1 = jnp.dot(x, w1_ref[...], preferred_element_type=jnp.float32) + b1_ref[...]
    h1 = jnp.maximum(h1, 0.0)                                  # ReLU (f32, VPU)
    h2 = jnp.dot(h1, w2_ref[...], preferred_element_type=jnp.float32) + b2_ref[...]
    h2 = jnp.maximum(h2, 0.0)                                  # ReLU (f32, VPU)
    # Final layer has N=1: a (bm,16)@(16,1) matmul wastes the MXU (1 live column
    # + result-FIFO latency).  Do it as a VPU multiply + small lane reduce.
    w3 = w3_ref[...].astype(jnp.float32)                       # (1, 16)
    y = jnp.sum(h2 * w3, axis=-1, keepdims=True) + b3_ref[0, 0]
    o_ref[...] = y.astype(o_ref.dtype)                         # (bm, 1)


def _pick_batch_tile(batch, feat_dim, requested):
    """Choose the batch tile: big (up to 2048) but VMEM-safe on every TPU gen."""
    if requested is None:
        # Double-buffered x tile budget ~8 MiB: 2 * bm * D * 4 bytes <= 8 MiB.
        vmem_cap = (8 * 1024 * 1024) // (8 * max(feat_dim, 1))
        bm = min(2048, vmem_cap)
    else:
        bm = requested
    bm = max(8, (bm // 8) * 8)                    # f32 sublane multiple
    bm = min(bm, ((batch + 7) // 8) * 8)          # never bigger than padded batch
    return bm


def my_model_forward(x, params, *, bm=None, compute_dtype=jnp.float32):
    """x: (B, D) float32 -> (B,) float32 (matches x.squeeze(1) in PyTorch)."""
    w1, b1, w2, b2, w3, b3 = params
    B, D = x.shape
    bm = _pick_batch_tile(B, D, bm)

    # Pad the batch to a multiple of the tile; extra rows are dropped at the end.
    Bp = pl.cdiv(B, bm) * bm
    if Bp != B:
        x = jnp.pad(x, ((0, Bp - B), (0, 0)))

    # Optional reduced-precision feed for the dominant x HBM stream + matmul
    # operands; biases and all accumulation stay f32.
    cd = jnp.dtype(compute_dtype)
    x_in = x.astype(cd)
    w1_in = w1.astype(cd)
    w2_in = w2.astype(cd)
    w3_row = w3.reshape(1, -1).astype(cd)            # (1, 16) row for VPU final layer
    b1_in = b1.astype(jnp.float32)
    b2_in = b2.astype(jnp.float32)
    b3_in = b3.reshape(1, 1).astype(jnp.float32)     # SMEM scalar

    grid = (Bp // bm,)
    full = lambda a: pl.BlockSpec(a.shape, lambda i: (0, 0))

    out2d = pl.pallas_call(
        mlp_kernel,
        out_shape=jax.ShapeDtypeStruct((Bp, 1), jnp.float32),
        grid_spec=pltpu.PrefetchScalarGridSpec(
            num_scalar_prefetch=0,
            grid=grid,
            in_specs=[
                pl.BlockSpec((bm, D), lambda i: (i, 0)),             # x tile
                full(w1_in), full(b1_in),
                full(w2_in), full(b2_in),
                full(w3_row),
                pl.BlockSpec(memory_space=pltpu.MemorySpace.SMEM),   # b3 scalar
            ],
            out_specs=pl.BlockSpec((bm, 1), lambda i: (i, 0)),
        ),
        compiler_params=pltpu.CompilerParams(
            # Batch axis is embarrassingly parallel -> megacore sharding on v7x.
            dimension_semantics=("parallel",)),
    )(x_in, w1_in, b1_in, w2_in, b2_in, w3_row, b3_in)
    return out2d[:B, 0]                               # drop padding + squeeze(1)


def init_params(key, input_dim):
    """Deterministic init mimicking PyTorch nn.Linear default (U(+/- 1/sqrt(fan_in)))."""
    def linear(key, fan_in, fan_out):
        kw, kb = jax.random.split(key)
        bound = 1.0 / jnp.sqrt(jnp.float32(fan_in))
        w = jax.random.uniform(kw, (fan_in, fan_out), jnp.float32, -bound, bound)
        b = jax.random.uniform(kb, (1, fan_out), jnp.float32, -bound, bound)
        return w, b

    k1, k2, k3 = jax.random.split(key, 3)
    w1, b1 = linear(k1, input_dim, 32)
    w2, b2 = linear(k2, 32, 16)
    w3, b3 = linear(k3, 16, 1)
    return (w1, b1, w2, b2, w3, b3)


if __name__ == "__main__":
    key = jax.random.PRNGKey(0)
    kx, kp = jax.random.split(key)

    batch, input_dim = 10, 64          # batch deliberately NOT a multiple of 8 (tail path)
    x = jax.random.normal(kx, (batch, input_dim), jnp.float32)
    params = init_params(kp, input_dim)

    # plain-JAX reference
    w1, b1, w2, b2, w3, b3 = params
    ref = jnp.maximum(x @ w1 + b1, 0.0)
    ref = jnp.maximum(ref @ w2 + b2, 0.0)
    ref = (ref @ w3 + b3)[:, 0]

    # f32 path
    out = jax.block_until_ready(my_model_forward(x, params))
    assert out.shape == (batch,)
    assert jnp.allclose(out, ref, atol=1e-5, rtol=1e-5)

    # bf16-feed path (bandwidth optimization on v6e/v7x); looser tolerance.
    out_bf16 = jax.block_until_ready(
        my_model_forward(x, params, compute_dtype=jnp.bfloat16))
    assert out_bf16.shape == (batch,)
    assert jnp.allclose(out_bf16, ref, atol=1e-1, rtol=1e-1)

    print("KERNEL_OK")
</pallas_src>

<mosaic_0001>
module attributes {stable_mosaic.version = 11 : i64} {
  func.func @mlp_kernel(%arg0: i32, %arg1: memref<16x64xf32, #tpu.memory_space<vmem>>, %arg2: memref<64x32xf32, #tpu.memory_space<vmem>>, %arg3: memref<1x32xf32, #tpu.memory_space<vmem>>, %arg4: memref<32x16xf32, #tpu.memory_space<vmem>>, %arg5: memref<1x16xf32, #tpu.memory_space<vmem>>, %arg6: memref<1x16xf32, #tpu.memory_space<vmem>>, %arg7: memref<1x1xf32, #tpu.memory_space<smem>>, %arg8: memref<16x1xf32, #tpu.memory_space<vmem>>) attributes {dimension_semantics = [#tpu.dimension_semantics<parallel>], iteration_bounds = array<i64: 1>, scalar_prefetch = 0 : i64, scratch_operands = 0 : i64, tpu.core_type = #tpu.core_type<tc>, window_params = [{transform_indices = @transform_0, window_bounds = array<i64: 16, 64>}, {pipeline_mode = #tpu.pipeline_mode<synchronous>, transform_indices = @transform_1, window_bounds = array<i64: 64, 32>}, {pipeline_mode = #tpu.pipeline_mode<synchronous>, transform_indices = @transform_2, window_bounds = array<i64: 1, 32>}, {pipeline_mode = #tpu.pipeline_mode<synchronous>, transform_indices = @transform_3, window_bounds = array<i64: 32, 16>}, {pipeline_mode = #tpu.pipeline_mode<synchronous>, transform_indices = @transform_4, window_bounds = array<i64: 1, 16>}, {pipeline_mode = #tpu.pipeline_mode<synchronous>, transform_indices = @transform_5, window_bounds = array<i64: 1, 16>}, {transform_indices = @transform_6, window_bounds = array<i64: 1, 1>}, {transform_indices = @transform_7, window_bounds = array<i64: 16, 1>}]} {
    %c0 = arith.constant 0 : index
    %c0_0 = arith.constant 0 : index
    %0 = vector.load %arg1[%c0, %c0_0] : memref<16x64xf32, #tpu.memory_space<vmem>>, vector<16x64xf32>
    %c0_1 = arith.constant 0 : index
    %c0_2 = arith.constant 0 : index
    %1 = vector.load %arg2[%c0_1, %c0_2] : memref<64x32xf32, #tpu.memory_space<vmem>>, vector<64x32xf32>
    %cst = arith.constant dense<0.000000e+00> : vector<16x32xf32>
    %2 = tpu.matmul %0, %1, %cst {dimension_numbers = #tpu.dot_dimension_numbers<[1], [0], [0], [1], [0, 0, 1, 1], [], []>} : vector<16x64xf32>, vector<64x32xf32>, vector<16x32xf32> -> vector<16x32xf32>
    %c0_3 = arith.constant 0 : index
    %c0_4 = arith.constant 0 : index
    %3 = vector.load %arg3[%c0_3, %c0_4] : memref<1x32xf32, #tpu.memory_space<vmem>>, vector<1x32xf32>
    %4 = vector.broadcast %3 : vector<1x32xf32> to vector<16x32xf32>
    %5 = arith.addf %2, %4 : vector<16x32xf32>
    %cst_5 = arith.constant 0.000000e+00 : f32
    %6 = vector.broadcast %cst_5 : f32 to vector<16x32xf32>
    %7 = arith.maximumf %5, %6 : vector<16x32xf32>
    %c0_6 = arith.constant 0 : index
    %c0_7 = arith.constant 0 : index
    %8 = vector.load %arg4[%c0_6, %c0_7] : memref<32x16xf32, #tpu.memory_space<vmem>>, vector<32x16xf32>
    %cst_8 = arith.constant dense<0.000000e+00> : vector<16x16xf32>
    %9 = tpu.matmul %7, %8, %cst_8 {dimension_numbers = #tpu.dot_dimension_numbers<[1], [0], [0], [1], [0, 0, 1, 1], [], []>} : vector<16x32xf32>, vector<32x16xf32>, vector<16x16xf32> -> vector<16x16xf32>
    %c0_9 = arith.constant 0 : index
    %c0_10 = arith.constant 0 : index
    %10 = vector.load %arg5[%c0_9, %c0_10] : memref<1x16xf32, #tpu.memory_space<vmem>>, vector<1x16xf32>
    %11 = vector.broadcast %10 : vector<1x16xf32> to vector<16x16xf32>
    %12 = arith.addf %9, %11 : vector<16x16xf32>
    %cst_11 = arith.constant 0.000000e+00 : f32
    %13 = vector.broadcast %cst_11 : f32 to vector<16x16xf32>
    %14 = arith.maximumf %12, %13 : vector<16x16xf32>
    %c0_12 = arith.constant 0 : index
    %c0_13 = arith.constant 0 : index
    %15 = vector.load %arg6[%c0_12, %c0_13] : memref<1x16xf32, #tpu.memory_space<vmem>>, vector<1x16xf32>
    %16 = vector.broadcast %15 : vector<1x16xf32> to vector<16x16xf32>
    %17 = arith.mulf %14, %16 : vector<16x16xf32>
    %cst_14 = arith.constant dense<0.000000e+00> : vector<16xf32>
    %18 = vector.multi_reduction <add>, %17, %cst_14 [1] : vector<16x16xf32> to vector<16xf32>
    %19 = vector.shape_cast %18 : vector<16xf32> to vector<16x1xf32>
    %c0_15 = arith.constant 0 : index
    %c0_16 = arith.constant 0 : index
    %20 = memref.load %arg7[%c0_15, %c0_16] : memref<1x1xf32, #tpu.memory_space<smem>>
    %21 = vector.broadcast %20 : f32 to vector<16x1xf32>
    %22 = arith.addf %19, %21 : vector<16x1xf32>
    %c0_17 = arith.constant 0 : index
    %c0_18 = arith.constant 0 : index
    %23 = vector.load %arg8[%c0_17, %c0_18] : memref<16x1xf32, #tpu.memory_space<vmem>>, vector<16x1xf32>
    tpu.vector_store %arg8[%c0_17, %c0_18], %22 {strides = array<i32>} : memref<16x1xf32, #tpu.memory_space<vmem>>, vector<16x1xf32>,
    return
  }
  func.func @transform_0(%arg0: i32) -> (i32, i32) {
    %c0_i32 = arith.constant 0 : i32
    %c0_i32_0 = arith.constant 0 : i32
    return %arg0, %c0_i32 : i32, i32
  }
  func.func @transform_1(%arg0: i32) -> (i32, i32) {
    %c0_i32 = arith.constant 0 : i32
    %c0_i32_0 = arith.constant 0 : i32
    %c0_i32_1 = arith.constant 0 : i32
    return %c0_i32, %c0_i32_0 : i32, i32
  }
  func.func @transform_2(%arg0: i32) -> (i32, i32) {
    %c0_i32 = arith.constant 0 : i32
    %c0_i32_0 = arith.constant 0 : i32
    %c0_i32_1 = arith.constant 0 : i32
    return %c0_i32, %c0_i32_0 : i32, i32
  }
  func.func @transform_3(%arg0: i32) -> (i32, i32) {
    %c0_i32 = arith.constant 0 : i32
    %c0_i32_0 = arith.constant 0 : i32
    %c0_i32_1 = arith.constant 0 : i32
    return %c0_i32, %c0_i32_0 : i32, i32
  }
  func.func @transform_4(%arg0: i32) -> (i32, i32) {
    %c0_i32 = arith.constant 0 : i32
    %c0_i32_0 = arith.constant 0 : i32
    %c0_i32_1 = arith.constant 0 : i32
    return %c0_i32, %c0_i32_0 : i32, i32
  }
  func.func @transform_5(%arg0: i32) -> (i32, i32) {
    %c0_i32 = arith.constant 0 : i32
    %c0_i32_0 = arith.constant 0 : i32
    %c0_i32_1 = arith.constant 0 : i32
    return %c0_i32, %c0_i32_0 : i32, i32
  }
  func.func @transform_6(%arg0: i32) -> (i32, i32) {
    %c0_i32 = arith.constant 0 : i32
    %c0_i32_0 = arith.constant 0 : i32
    %c0_i32_1 = arith.constant 0 : i32
    return %c0_i32, %c0_i32_0 : i32, i32
  }
  func.func @transform_7(%arg0: i32) -> (i32, i32) {
    %c0_i32 = arith.constant 0 : i32
    %c0_i32_0 = arith.constant 0 : i32
    return %arg0, %c0_i32 : i32, i32
  }
}

</mosaic_0001>

<bundles_post_ra>
// kernel: tpu_custom_call.1
= control target key start
LH: loop header
LB: loop body
LE: loop exit
PB: predicated region body
PF: predicated region fallthrough
CT: control target
= control target key end

     0   :  { %vm44_vm0 = vcmask 523264   ;;  %vm139_vm1 = vcmask 261120   ;;  %vm232_vm2 = vcmask 130048   ;;  %vm243_vm3 = vcmask 7168   ;;  %s429_s1 = inlined_call_operand.vmem [shape: f32[64,32], index: 1, kind: input, shape index: {}]   ;;  %s430_s0 = inlined_call_operand.vmem [shape: f32[16,64], index: 0, kind: input, shape index: {}]   ;;  %s431_s3 = inlined_call_operand.vmem [shape: f32[32,16], index: 3, kind: input, shape index: {}]   ;;  %s432_s2 = inlined_call_operand.vmem [shape: f32[1,32], index: 2, kind: input, shape index: {}]   ;;  %s433_s4 = inlined_call_operand.vmem [shape: f32[1,16], index: 4, kind: input, shape index: {}]   ;;  %s434_s5 = inlined_call_operand.vmem [shape: f32[1,16], index: 5, kind: input, shape index: {}]   ;;  %s435_s6 = inlined_call_operand.<no memory space> [shape: f32[1,1], index: 6, kind: input, shape index: {}]   ;;  %s436_s7 = inlined_call_operand.vmem [shape: f32[16,1], index: 7, kind: output, shape index: {}]  }
   0x1   :  { %v29_v0 = vld [vmem:[%s429_s1] sm:$0xff]  ;;  %v30_v1 = vld [vmem:[%s429_s1 + $0x8] sm:$0xff]  ;;  %v31_v2 = vld [vmem:[%s429_s1 + $0x10] sm:$0xff]  ;;  %v240_v39 = vstv %s435_s6 }
   0x2   :  { %v303_v3 = vpack.c.bf16 %v30_v1, %v29_v0  ;;  %v32_v4 = vld [vmem:[%s429_s1 + $0x18] sm:$0xff]  ;;  %v33_v6 = vld [vmem:[%s429_s1 + $0x20] sm:$0xff]  ;;  %v34_v7 = vld [vmem:[%s429_s1 + $0x28] sm:$0xff] }
   0x3   :  { %v307_v5 = vpack.c.bf16 %v32_v4, %v31_v2  ;;  %v27_v8 = vld [vmem:[%s430_s0] sm:$0xff]  ;;  %v129_v10 = vld [vmem:[%s431_s3 + $0x8] sm:$0xff]  ;;  %v311_v12 = vpack.c.bf16 %v34_v7, %v33_v6  ;;  %v35_v13 = vld [vmem:[%s429_s1 + $0x30] sm:$0xff] }
   0x4   :  { %304 = vmatprep.subr.bf16.mxu0 %v303_v3  ;;  %289 = vmatprep.mubr.msk.f32.mxu0 %vm44_vm0, %v27_v8  ;;  %v128_v9 = vld [vmem:[%s431_s3] sm:$0xff]  ;;  %v36_v14 = vld [vmem:[%s429_s1 + $0x38] sm:$0xff]  ;;  %v28_v16 = vld [vmem:[%s430_s0 + $0x8] sm:$0xff] }
   0x5   :  { %306 = vmatpush3.bf16.msra.mxu0 %v303_v3  ;;  %v319_v11 = vpack.c.bf16 %v129_v10, %v128_v9  ;;  %v315_v15 = vpack.c.bf16 %v36_v14, %v35_v13  ;;  %v130_v17 = vld [vmem:[%s431_s3 + $0x10] sm:$0xff]  ;;  %v131_v18 = vld [vmem:[%s431_s3 + $0x18] sm:$0xff]  ;;  %v250_v20 = vld [vmem:[%s432_s2] ss:$0 sm:$0xff] }
   0x6   :  { %308 = vmatprep.subr.bf16.mxu0 %v307_v5  ;;  %v323_v19 = vpack.c.bf16 %v131_v18, %v130_v17  ;;  %v253_v27 = vld [vmem:[%s433_s4] ss:$0 sm:$0xff] }
   0x7   :  { %320 = vmatprep.subr.bf16.mxu1 %v319_v11  ;;  %v256_v32 = vld [vmem:[%s434_s5] ss:$0 sm:$0xff] }
   0x8   :  { %322 = vmatpush3.bf16.msra.mxu1 %v319_v11 }
   0x9   :  { %310 = vmatpush3.bf16.msra.mxu0 %v307_v5  ;;  %324 = vmatprep.subr.bf16.mxu1 %v323_v19 }
   0xa   :  { %312 = vmatprep.subr.bf16.mxu0 %v311_v12 }
   0xc   :  { %326 = vmatpush3.bf16.msra.mxu1 %v323_v19 }
   0xd   :  { %314 = vmatpush3.bf16.msra.mxu0 %v311_v12 }
   0xe   :  { %316 = vmatprep.subr.bf16.mxu0 %v315_v15 }
  0x11   :  { %318 = vmatpush3.bf16.msra.mxu0 %v315_v15 }
  0x14   :  { %290 = vmatmul.mubr.msk.f32.vlgmr.msra.gmra.mrb[0].mxu0 %vm44_vm0, %v28_v16 }
  0xe7   :  { %v291_v21 = vpop.f32.mrb[0].mxu0 }
  0xe8   :  { %v123_v22 = vadd.f32 %v291_v21, %v250_v20  ;;  %v117_v23 = vpop.f32.mrb[1].mxu0 }
  0xe9   :  { %v118_v24 = vadd.f32 %v250_v20, %v117_v23 }
  0xea   :  { %v127_v26 = vmax.f32 %v123_v22, 0.0 }
  0xeb   :  { %v126_v25 = vmax.f32 %v118_v24, 0.0 }
  0xed   :  { %300 = vmatprep.mubr.msk.f32.mxu1 %vm139_vm1, %v126_v25 }
  0xee   :  { %301 = vmatmul.mubr.msk.f32.vlgmr.msra.gmra.mrb[0].mxu1 %vm139_vm1, %v127_v26 }
 0x1c1   :  { %v302_v28 = vpop.f32.mrb[0].mxu1 }
 0x1c2   :  { %v218_v29 = vadd.f32 %v302_v28, %v253_v27  ;;  %v212_v30 = vpop.f32.mrb[1].mxu1 }
 0x1c3   :  { %v213_v31 = vadd.f32 %v253_v27, %v212_v30 }
 0x1c4   :  { %v222_v33 = vmax.f32 %v218_v29, 0.0 }
 0x1c5   :  { %v221_v34 = vmax.f32 %v213_v31, 0.0 }
 0x1c6   :  { %v231_v37 = vmul.f32 %v256_v32, %v222_v33 }
 0x1c7   :  { %v230_v35 = vmul.f32 %v256_v32, %v221_v34 }
 0x1c8   :  { %v236_v38 = vsel %vm232_vm2, %v231_v37, 0.0 }
 0x1c9   :  { %v233_v36 = vsel %vm232_vm2, %v230_v35, 0.0 }
 0x1ca   :  { %234 = vadd.xlane.f32.xlu0 %v233_v36 }
 0x1ce   :  { %237 = vadd.xlane.f32.xlu0 %v236_v38 }
 0x257   :  { %v235_v40 = vpop.xlane.xlu0 %234 }
 0x258   :  { %v241_v41 = vadd.f32 %v240_v39, %v235_v40 }
 0x25a   :  { %244 = vst.msk [vmem:[%s436_s7] sm:$0xff] %vm243_vm3, %v241_v41 }
 0x25b   :  { %v238_v42 = vpop.xlane.xlu0 %237 }
 0x25c   :  { %v242_v43 = vadd.f32 %v240_v39, %v238_v42 }
 0x25e   :  { %245 = vst.msk [vmem:[%s436_s7 + $0x8] sm:$0xff] %vm243_vm3, %v242_v43 }

</bundles_post_ra>
